<compile_context>
chip_gen: v5e
topology: v5e:2x2
jax: 0.10.0
libtpu: 0.0.40
codegen_flags: <defaults>
</compile_context>

<pallas_src>
import functools

import jax
import jax.numpy as jnp
from jax import lax
from jax.experimental import pallas as pl
from jax.experimental.pallas import tpu as pltpu


# ----------------------------------------------------------------------------
# Pallas kernel: RIM attention for a block of `bt` batch elements
# ----------------------------------------------------------------------------
def _rim_attention_kernel(x_ref, h_ref, wk_ref, wv_ref, wq_ref, ebs_ref,
                          eexp_ref, att_ref, sim_ref,
                          *, bt, seq, num_kernels, att_dim):
    """One grid step handles `bt` batch elements, all K kernels vectorized.

    x_ref    : (bt, S, D)        raw input (NO null row; handled analytically)
    h_ref    : (bt, 1, K*H)      flattened RIM hidden states
    wk_ref   : (D, K*A)          fused input -> key maps
    wv_ref   : (D, K*A)          fused input -> value maps
    wq_ref   : (K*H, K*A)        block-diagonal hidden -> query map
    ebs_ref  : (K*A, K)          0/1 block-sum matrix (sum each A-lane group)
    eexp_ref : (K, K*A)          0/1 expand matrix (repeat each k over A lanes)
    att_ref  : (bt, 1, K*A)      attended input (softmax-weighted values)
    sim_ref  : (bt, S, K)        similarity to the real tokens (null col == 0)
    """
    S, K, A = seq, num_kernels, att_dim
    KA = K * A

    x2 = x_ref[...].reshape(bt * S, -1)                                    # (bt*S, D)

    # Fused projections: one MXU matmul each for all K kernels.
    keys = jnp.dot(x2, wk_ref[...], preferred_element_type=jnp.float32)    # (bt*S, K*A)
    vals = jnp.dot(x2, wv_ref[...], preferred_element_type=jnp.float32)    # (bt*S, K*A)
    h2 = h_ref[...].reshape(bt, -1)                                        # (bt, K*H)
    q = jnp.dot(h2, wq_ref[...], preferred_element_type=jnp.float32)       # (bt, K*A)

    # Similarity: per-kernel <key, query> = elementwise product followed by a
    # block-sum over each A-lane group (0/1 matrix on the MXU).
    t = (keys.reshape(bt, S, KA) * q[:, None, :]).reshape(bt * S, KA)
    sim2 = jnp.dot(t, ebs_ref[...], preferred_element_type=jnp.float32)    # (bt*S, K)
    sim3 = sim2.reshape(bt, S, K)

    # Softmax over the sequence axis for all K rows at once, including the
    # implicit null token: its similarity is exactly 0, its value exactly 0.
    m = jnp.maximum(jnp.max(sim3, axis=1, keepdims=True), 0.0)             # (bt, 1, K)
    e = jnp.exp(sim3 - m)                                                  # (bt, S, K)
    denom = jnp.sum(e, axis=1, keepdims=True) + jnp.exp(-m)                # (bt, 1, K)
    p3 = e * pl.reciprocal(denom, approx=True)                             # (bt, S, K)

    # Attended input: broadcast p over each kernel's A lanes (0/1 matrix),
    # multiply with the values, reduce over the sequence (sublane) axis.
    pexp = jnp.dot(p3.reshape(bt * S, K), eexp_ref[...],
                   preferred_element_type=jnp.float32)                     # (bt*S, K*A)
    att = jnp.sum((pexp * vals).reshape(bt, S, KA), axis=1)                # (bt, K*A)

    sim_ref[...] = sim3
    att_ref[...] = att.reshape(bt, 1, KA)


def rim_attention_pallas(x, hidden, Wq, Wk, Wv):
    """Returns (attended (B,K,A), sim (B,K,S+1)); sim's last column is the
    (exactly-zero) null-token similarity, matching the torch null concat."""
    B, S, D = x.shape
    K, H, A = Wq.shape
    KA, KH = K * A, K * H
    f32 = jnp.float32

    # Fold K into the lane dimension of all weight maps (done once, in JAX).
    wk_flat = jnp.transpose(Wk, (1, 0, 2)).reshape(D, KA)
    wv_flat = jnp.transpose(Wv, (1, 0, 2)).reshape(D, KA)
    eye_k = jnp.eye(K, dtype=f32)
    wq_bd = (eye_k[:, None, :, None] * Wq[:, :, None, :]).reshape(KH, KA)
    e_blocksum = jnp.repeat(eye_k, A, axis=0)          # (K*A, K)
    e_expand = e_blocksum.T                            # (K, K*A)
    h_flat = hidden.reshape(B, 1, KH)

    # <=2 parallel grid steps: both v7x TensorCores get work, while single-TC
    # v5e/v6e pay at most one extra grid step of overhead.
    num_blocks = 2 if (B >= 2 and B % 2 == 0) else 1
    bt = B // num_blocks

    kernel = functools.partial(_rim_attention_kernel, bt=bt, seq=S,
                               num_kernels=K, att_dim=A)
    att_flat, sim_sk = pl.pallas_call(
        kernel,
        grid=(num_blocks,),
        in_specs=[
            pl.BlockSpec((bt, S, D), lambda b: (b, 0, 0)),     # x
            pl.BlockSpec((bt, 1, KH), lambda b: (b, 0, 0)),    # hidden (flat)
            pl.BlockSpec((D, KA), lambda b: (0, 0)),           # Wk (fused)
            pl.BlockSpec((D, KA), lambda b: (0, 0)),           # Wv (fused)
            pl.BlockSpec((KH, KA), lambda b: (0, 0)),          # Wq (block-diag)
            pl.BlockSpec((KA, K), lambda b: (0, 0)),           # block-sum 0/1
            pl.BlockSpec((K, KA), lambda b: (0, 0)),           # expand 0/1
        ],
        out_specs=(
            pl.BlockSpec((bt, 1, KA), lambda b: (b, 0, 0)),    # attended (flat)
            pl.BlockSpec((bt, S, K), lambda b: (b, 0, 0)),     # similarity
        ),
        out_shape=(
            jax.ShapeDtypeStruct((B, 1, KA), f32),
            jax.ShapeDtypeStruct((B, S, K), f32),
        ),
        compiler_params=pltpu.CompilerParams(
            dimension_semantics=("parallel",)),
    )(x, h_flat, wk_flat, wv_flat, wq_bd, e_blocksum, e_expand)

    attended = att_flat.reshape(B, K, A)
    sim = jnp.swapaxes(sim_sk, 1, 2)                           # (B, K, S)
    sim_full = jnp.concatenate([sim, jnp.zeros((B, K, 1), f32)], axis=-1)
    return attended, sim_full


# ----------------------------------------------------------------------------
# Full forward (glue in plain JAX), mirrors RIMModule.forward
# ----------------------------------------------------------------------------
@functools.partial(jax.jit, static_argnames=("active_kernels",))
def rim_forward(x, hidden, params, active_kernels):
    Wq, Wk, Wv, Win, Wh, bias = params
    B, S, D = x.shape
    K, H, A = Wq.shape

    attended, sim_full = rim_attention_pallas(x, hidden, Wq, Wk, Wv)
    attended4 = attended[..., None]                            # (B, K, A, 1) as in torch

    # torch.topk(sim[:, :, -1], active, largest=False) + index_fill_.
    # (As in the original module, the null column is identically zero, so the
    # selection is tie-broken by index order.)
    last = sim_full[:, :, -1]                                  # (B, K)
    _, topk_idx = lax.top_k(-last, active_kernels)
    sel = jnp.max(jax.nn.one_hot(topk_idx, K, dtype=jnp.float32), axis=1)  # (B, K)
    update_mask = jnp.broadcast_to(sel[:, :, None], (B, K, H))

    # TODO(synk): `_dynamics_module` is an injected dependency (not defined in
    # models.py); stand-in is a deterministic per-kernel masked tanh-RNN cell.
    a = attended4[..., 0]                                      # (B, K, A)
    cand = jnp.tanh(jnp.einsum('bka,kah->bkh', a, Win)
                    + jnp.einsum('bkh,khg->bkg', hidden, Wh) + bias)
    updated_hidden = update_mask * cand + (1.0 - update_mask) * hidden
    return updated_hidden, (attended4, sim_full, update_mask)


# ----------------------------------------------------------------------------
# Pure-JAX reference of the attention path (explicit null concat)
# ----------------------------------------------------------------------------
def rim_attention_ref(x_cat, hidden, Wq, Wk, Wv):
    q = jnp.einsum('bkh,kha->bka', hidden, Wq, precision='highest')
    keys = jnp.einsum('bsd,kda->bksa', x_cat, Wk, precision='highest')
    vals = jnp.einsum('bsd,kda->bksa', x_cat, Wv, precision='highest')
    sim = jnp.einsum('bksa,bka->bks', keys, q, precision='highest')
    p = jax.nn.softmax(sim, axis=-1)
    att = jnp.einsum('bksa,bks->bka', vals, p, precision='highest')
    return att, sim


# ----------------------------------------------------------------------------
if __name__ == "__main__":
    # Small shapes consistent with the module's constructor / forward.
    B, S, D = 2, 8, 8          # batch, seq_len, input_dim
    K, H, A = 4, 32, 16        # num_kernels, hidden_state_size, attended_input_dim
    ACTIVE = 2                 # active_kernels

    key = jax.random.PRNGKey(0)
    ks = jax.random.split(key, 8)
    x = jax.random.normal(ks[0], (B, S, D), jnp.float32)
    # reset(init_hidden=...) with deterministic non-zero hidden states
    hidden = jax.random.uniform(ks[1], (B, K, H), jnp.float32)

    # Parameters (torch.rand -> uniform [0, 1))
    Wq = jax.random.uniform(ks[2], (K, H, A), jnp.float32)
    Wk = jax.random.uniform(ks[3], (K, D, A), jnp.float32)
    Wv = jax.random.uniform(ks[4], (K, D, A), jnp.float32)
    # stand-in dynamics-module parameters
    Win = jax.random.uniform(ks[5], (K, A, H), jnp.float32) * 0.1
    Wh = jax.random.uniform(ks[6], (K, H, H), jnp.float32) * 0.1
    bias = jax.random.uniform(ks[7], (K, H), jnp.float32) * 0.1

    params = (Wq, Wk, Wv, Win, Wh, bias)
    updated_hidden, (attended, sim, mask) = rim_forward(x, hidden, params, ACTIVE)
    updated_hidden = jax.block_until_ready(updated_hidden)

    # Sanity-check the Pallas attention path against a pure-JAX reference
    # (reference uses the explicit null-token concat, as in the torch code).
    null = jnp.zeros((B, 1, D), x.dtype)
    x_cat = jnp.concatenate([x, null], axis=1)
    att_want, sim_want = rim_attention_ref(x_cat, hidden, Wq, Wk, Wv)
    assert updated_hidden.shape == (B, K, H)
    assert bool(jnp.all(jnp.isfinite(updated_hidden)))
    assert bool(jnp.allclose(attended[..., 0], att_want, rtol=1e-2, atol=1e-3)), "attended mismatch"
    assert bool(jnp.allclose(sim, sim_want, rtol=1e-2, atol=1e-1)), "similarity mismatch"

    print("KERNEL_OK")
</pallas_src>

<mosaic_0001>
module attributes {stable_mosaic.version = 11 : i64} {
  func.func @_rim_attention_kernel(%arg0: i32, %arg1: memref<1x8x8xf32, #tpu.memory_space<vmem>>, %arg2: memref<1x1x128xf32, #tpu.memory_space<vmem>>, %arg3: memref<8x64xf32, #tpu.memory_space<vmem>>, %arg4: memref<8x64xf32, #tpu.memory_space<vmem>>, %arg5: memref<128x64xf32, #tpu.memory_space<vmem>>, %arg6: memref<64x4xf32, #tpu.memory_space<vmem>>, %arg7: memref<4x64xf32, #tpu.memory_space<vmem>>, %arg8: memref<1x1x64xf32, #tpu.memory_space<vmem>>, %arg9: memref<1x8x4xf32, #tpu.memory_space<vmem>>) attributes {dimension_semantics = [#tpu.dimension_semantics<parallel>], iteration_bounds = array<i64: 2>, scalar_prefetch = 0 : i64, scratch_operands = 0 : i64, tpu.core_type = #tpu.core_type<tc>, window_params = [{transform_indices = @transform_0, window_bounds = array<i64: 1, 8, 8>}, {transform_indices = @transform_1, window_bounds = array<i64: 1, 1, 128>}, {pipeline_mode = #tpu.pipeline_mode<synchronous>, transform_indices = @transform_2, window_bounds = array<i64: 8, 64>}, {pipeline_mode = #tpu.pipeline_mode<synchronous>, transform_indices = @transform_3, window_bounds = array<i64: 8, 64>}, {pipeline_mode = #tpu.pipeline_mode<synchronous>, transform_indices = @transform_4, window_bounds = array<i64: 128, 64>}, {pipeline_mode = #tpu.pipeline_mode<synchronous>, transform_indices = @transform_5, window_bounds = array<i64: 64, 4>}, {pipeline_mode = #tpu.pipeline_mode<synchronous>, transform_indices = @transform_6, window_bounds = array<i64: 4, 64>}, {transform_indices = @transform_7, window_bounds = array<i64: 1, 1, 64>}, {transform_indices = @transform_8, window_bounds = array<i64: 1, 8, 4>}]} {
    %c0 = arith.constant 0 : index
    %c0_0 = arith.constant 0 : index
    %c0_1 = arith.constant 0 : index
    %0 = vector.load %arg1[%c0, %c0_0, %c0_1] : memref<1x8x8xf32, #tpu.memory_space<vmem>>, vector<1x8x8xf32>
    %1 = vector.shape_cast %0 : vector<1x8x8xf32> to vector<8x8xf32>
    %c0_2 = arith.constant 0 : index
    %c0_3 = arith.constant 0 : index
    %2 = vector.load %arg3[%c0_2, %c0_3] : memref<8x64xf32, #tpu.memory_space<vmem>>, vector<8x64xf32>
    %cst = arith.constant dense<0.000000e+00> : vector<8x64xf32>
    %3 = tpu.matmul %1, %2, %cst {dimension_numbers = #tpu.dot_dimension_numbers<[1], [0], [0], [1], [0, 0, 1, 1], [], []>} : vector<8x8xf32>, vector<8x64xf32>, vector<8x64xf32> -> vector<8x64xf32>
    %c0_4 = arith.constant 0 : index
    %c0_5 = arith.constant 0 : index
    %4 = vector.load %arg4[%c0_4, %c0_5] : memref<8x64xf32, #tpu.memory_space<vmem>>, vector<8x64xf32>
    %cst_6 = arith.constant dense<0.000000e+00> : vector<8x64xf32>
    %5 = tpu.matmul %1, %4, %cst_6 {dimension_numbers = #tpu.dot_dimension_numbers<[1], [0], [0], [1], [0, 0, 1, 1], [], []>} : vector<8x8xf32>, vector<8x64xf32>, vector<8x64xf32> -> vector<8x64xf32>
    %c0_7 = arith.constant 0 : index
    %c0_8 = arith.constant 0 : index
    %c0_9 = arith.constant 0 : index
    %6 = vector.load %arg2[%c0_7, %c0_8, %c0_9] : memref<1x1x128xf32, #tpu.memory_space<vmem>>, vector<1x1x128xf32>
    %7 = vector.shape_cast %6 : vector<1x1x128xf32> to vector<1x128xf32>
    %c0_10 = arith.constant 0 : index
    %c0_11 = arith.constant 0 : index
    %8 = vector.load %arg5[%c0_10, %c0_11] : memref<128x64xf32, #tpu.memory_space<vmem>>, vector<128x64xf32>
    %cst_12 = arith.constant dense<0.000000e+00> : vector<1x64xf32>
    %9 = tpu.matmul %7, %8, %cst_12 {dimension_numbers = #tpu.dot_dimension_numbers<[1], [0], [0], [1], [0, 0, 1, 1], [], []>} : vector<1x128xf32>, vector<128x64xf32>, vector<1x64xf32> -> vector<1x64xf32>
    %10 = vector.shape_cast %3 : vector<8x64xf32> to vector<1x8x64xf32>
    %11 = vector.shape_cast %9 : vector<1x64xf32> to vector<1x1x64xf32>
    %12 = vector.broadcast %11 : vector<1x1x64xf32> to vector<1x8x64xf32>
    %13 = arith.mulf %10, %12 : vector<1x8x64xf32>
    %14 = vector.shape_cast %13 : vector<1x8x64xf32> to vector<8x64xf32>
    %c0_13 = arith.constant 0 : index
    %c0_14 = arith.constant 0 : index
    %15 = vector.load %arg6[%c0_13, %c0_14] : memref<64x4xf32, #tpu.memory_space<vmem>>, vector<64x4xf32>
    %cst_15 = arith.constant dense<0.000000e+00> : vector<8x4xf32>
    %16 = tpu.matmul %14, %15, %cst_15 {dimension_numbers = #tpu.dot_dimension_numbers<[1], [0], [0], [1], [0, 0, 1, 1], [], []>} : vector<8x64xf32>, vector<64x4xf32>, vector<8x4xf32> -> vector<8x4xf32>
    %17 = vector.shape_cast %16 : vector<8x4xf32> to vector<1x8x4xf32>
    %cst_16 = arith.constant dense<0xFF800000> : vector<1x4xf32>
    %18 = vector.multi_reduction <maximumf>, %17, %cst_16 [1] : vector<1x8x4xf32> to vector<1x4xf32>
    %19 = vector.shape_cast %18 : vector<1x4xf32> to vector<1x1x4xf32>
    %cst_17 = arith.constant 0.000000e+00 : f32
    %20 = vector.broadcast %cst_17 : f32 to vector<1x1x4xf32>
    %21 = arith.maximumf %19, %20 : vector<1x1x4xf32>
    %22 = vector.broadcast %21 : vector<1x1x4xf32> to vector<1x8x4xf32>
    %23 = arith.subf %17, %22 : vector<1x8x4xf32>
    %24 = math.exp %23 : vector<1x8x4xf32>
    %cst_18 = arith.constant dense<0.000000e+00> : vector<1x4xf32>
    %25 = vector.multi_reduction <add>, %24, %cst_18 [1] : vector<1x8x4xf32> to vector<1x4xf32>
    %26 = vector.shape_cast %25 : vector<1x4xf32> to vector<1x1x4xf32>
    %cst_19 = arith.constant 0.000000e+00 : f32
    %27 = vector.broadcast %cst_19 : f32 to vector<1x1x4xf32>
    %28 = arith.subf %27, %21 : vector<1x1x4xf32>
    %29 = math.exp %28 : vector<1x1x4xf32>
    %30 = arith.addf %26, %29 : vector<1x1x4xf32>
    %31 = tpu.reciprocal %30 {approx = true} : vector<1x1x4xf32> -> vector<1x1x4xf32>
    %32 = vector.broadcast %31 : vector<1x1x4xf32> to vector<1x8x4xf32>
    %33 = arith.mulf %24, %32 : vector<1x8x4xf32>
    %34 = vector.shape_cast %33 : vector<1x8x4xf32> to vector<8x4xf32>
    %c0_20 = arith.constant 0 : index
    %c0_21 = arith.constant 0 : index
    %35 = vector.load %arg7[%c0_20, %c0_21] : memref<4x64xf32, #tpu.memory_space<vmem>>, vector<4x64xf32>
    %cst_22 = arith.constant dense<0.000000e+00> : vector<8x64xf32>
    %36 = tpu.matmul %34, %35, %cst_22 {dimension_numbers = #tpu.dot_dimension_numbers<[1], [0], [0], [1], [0, 0, 1, 1], [], []>} : vector<8x4xf32>, vector<4x64xf32>, vector<8x64xf32> -> vector<8x64xf32>
    %37 = arith.mulf %36, %5 : vector<8x64xf32>
    %38 = vector.shape_cast %37 : vector<8x64xf32> to vector<1x8x64xf32>
    %cst_23 = arith.constant dense<0.000000e+00> : vector<1x64xf32>
    %39 = vector.multi_reduction <add>, %38, %cst_23 [1] : vector<1x8x64xf32> to vector<1x64xf32>
    %c0_24 = arith.constant 0 : index
    %c0_25 = arith.constant 0 : index
    %c0_26 = arith.constant 0 : index
    %40 = vector.load %arg9[%c0_24, %c0_25, %c0_26] : memref<1x8x4xf32, #tpu.memory_space<vmem>>, vector<1x8x4xf32>
    tpu.vector_store %arg9[%c0_24, %c0_25, %c0_26], %17 {strides = array<i32>} : memref<1x8x4xf32, #tpu.memory_space<vmem>>, vector<1x8x4xf32>,
    %41 = vector.shape_cast %39 : vector<1x64xf32> to vector<1x1x64xf32>
    %c0_27 = arith.constant 0 : index
    %c0_28 = arith.constant 0 : index
    %c0_29 = arith.constant 0 : index
    %42 = vector.load %arg8[%c0_27, %c0_28, %c0_29] : memref<1x1x64xf32, #tpu.memory_space<vmem>>, vector<1x1x64xf32>
    tpu.vector_store %arg8[%c0_27, %c0_28, %c0_29], %41 {strides = array<i32>} : memref<1x1x64xf32, #tpu.memory_space<vmem>>, vector<1x1x64xf32>,
    return
  }
  func.func @transform_0(%arg0: i32) -> (i32, i32, i32) {
    %c0_i32 = arith.constant 0 : i32
    %c0_i32_0 = arith.constant 0 : i32
    %c0_i32_1 = arith.constant 0 : i32
    return %arg0, %c0_i32, %c0_i32_0 : i32, i32, i32
  }
  func.func @transform_1(%arg0: i32) -> (i32, i32, i32) {
    %c0_i32 = arith.constant 0 : i32
    %c0_i32_0 = arith.constant 0 : i32
    %c0_i32_1 = arith.constant 0 : i32
    return %arg0, %c0_i32, %c0_i32_0 : i32, i32, i32
  }
  func.func @transform_2(%arg0: i32) -> (i32, i32) {
    %c0_i32 = arith.constant 0 : i32
    %c0_i32_0 = arith.constant 0 : i32
    %c0_i32_1 = arith.constant 0 : i32
    return %c0_i32, %c0_i32_0 : i32, i32
  }
  func.func @transform_3(%arg0: i32) -> (i32, i32) {
    %c0_i32 = arith.constant 0 : i32
    %c0_i32_0 = arith.constant 0 : i32
    %c0_i32_1 = arith.constant 0 : i32
    return %c0_i32, %c0_i32_0 : i32, i32
  }
  func.func @transform_4(%arg0: i32) -> (i32, i32) {
    %c0_i32 = arith.constant 0 : i32
    %c0_i32_0 = arith.constant 0 : i32
    %c0_i32_1 = arith.constant 0 : i32
    return %c0_i32, %c0_i32_0 : i32, i32
  }
  func.func @transform_5(%arg0: i32) -> (i32, i32) {
    %c0_i32 = arith.constant 0 : i32
    %c0_i32_0 = arith.constant 0 : i32
    %c0_i32_1 = arith.constant 0 : i32
    return %c0_i32, %c0_i32_0 : i32, i32
  }
  func.func @transform_6(%arg0: i32) -> (i32, i32) {
    %c0_i32 = arith.constant 0 : i32
    %c0_i32_0 = arith.constant 0 : i32
    %c0_i32_1 = arith.constant 0 : i32
    return %c0_i32, %c0_i32_0 : i32, i32
  }
  func.func @transform_7(%arg0: i32) -> (i32, i32, i32) {
    %c0_i32 = arith.constant 0 : i32
    %c0_i32_0 = arith.constant 0 : i32
    %c0_i32_1 = arith.constant 0 : i32
    return %arg0, %c0_i32, %c0_i32_0 : i32, i32, i32
  }
  func.func @transform_8(%arg0: i32) -> (i32, i32, i32) {
    %c0_i32 = arith.constant 0 : i32
    %c0_i32_0 = arith.constant 0 : i32
    %c0_i32_1 = arith.constant 0 : i32
    return %arg0, %c0_i32, %c0_i32_0 : i32, i32, i32
  }
}

</mosaic_0001>

<bundles_post_ra>
// kernel: rim_forward.1
= control target key start
LH: loop header
LB: loop body
LE: loop exit
PB: predicated region body
PF: predicated region fallthrough
CT: control target
= control target key end

     0   :  { %s674_s27 = smov 0   ;;  %s799_s0 = inlined_call_operand.vmem [shape: f32[2,8,8], index: 0, kind: input, shape index: {}]   ;;  %s800_s1 = inlined_call_operand.vmem [shape: f32[2,1,128], index: 1, kind: input, shape index: {}]   ;;  %s801_s2 = inlined_call_operand.vmem [shape: f32[8,64], index: 2, kind: input, shape index: {}]   ;;  %s802_s3 = inlined_call_operand.vmem [shape: f32[8,64], index: 3, kind: input, shape index: {}]   ;;  %s803_s4 = inlined_call_operand.vmem [shape: f32[128,64], index: 4, kind: input, shape index: {}]   ;;  %s804_s5 = inlined_call_operand.vmem [shape: f32[64,4], index: 5, kind: input, shape index: {}]   ;;  %s805_s6 = inlined_call_operand.vmem [shape: f32[4,64], index: 6, kind: input, shape index: {}]   ;;  %s806_s7 = inlined_call_operand.vmem [shape: f32[2,1,64], index: 7, kind: output, shape index: {0}]   ;;  %s807_s8 = inlined_call_operand.vmem [shape: f32[2,8,4], index: 8, kind: output, shape index: {1}]  }
   0x1 LB: > { %s593_s28 = sadd.s32 4294967295, %s627_s27   ;;  %p597_p0 = scmp.ge.s32.totalorder %s627_s27, 1  ;;  %s627_s27 = sphi %s674_s27, %s19_s27  }
   0x2   : > { %p272_p1 = scmp.lt.s32.totalorder %s627_s27, 3 }
   0x4   : > { %p273_p2 = pnand %p597_p0, %p272_p1 }
   0x5   : > { %p310_p3 = scmp.lt.s32.totalorder (!%p273_p2), %s593_s28, 1 }
   0x6   : > { %276 = sbr.rel (%p273_p2) target bundleno = 503 (0x1f7), region = 48 }
   0xb   : > { %v387_v0 = vld [vmem:[%s803_s4 + $0x78] sm:$0xff]  ;;  %v386_v1 = vld [vmem:[%s803_s4 + $0x70] sm:$0xff]  ;;  %v385_v2 = vld [vmem:[%s803_s4 + $0x68] sm:$0xff]  ;;  %s809_s28 = smov (!%p310_p3, %s593_s28), 1  ;;  %vm326_vm0 = vcmask 64512   ;;  %vm418_vm1 = vcmask 523264  }
   0xc   : > { %388 = vmatpush.msra.mxu2 %v387_v0  ;;  %v384_v3 = vld [vmem:[%s803_s4 + $0x60] sm:$0xff]  ;;  %s598_s17 = sshll.u32 %s809_s28, 3  ;;  %v383_v5 = vld [vmem:[%s803_s4 + $0x58] sm:$0xff]  ;;  %v416_v7 = vld [vmem:[%s804_s5 + $0x30] sm:$0xff]  ;;  %s316_s16 = scalar_lea.vmem %s800_s1, %s809_s28  ;;  %vm442_vm2 = vcmask 31744   ;;  %vm471_vm3 = vcmask 1043456  }
   0xd   : > { %v325_v4 = vld [vmem:[%s801_s2] sm:$0xff]  ;;  %s313_s22 = scalar_lea.vmem %s799_s0, %s598_s17  ;;  %v417_v6 = vld [vmem:[%s804_s5 + $0x38] sm:$0xff]  ;;  %v382_v9 = vld [vmem:[%s803_s4 + $0x50] sm:$0xff]  ;;  %s323_s30 = scalar_lea.vmem %s807_s8, %s598_s17  ;;  %vm504_vm4 = vcmask 516096  }
   0xe   : > { %389 = vmatpush.msra.mxu2 %v386_v1  ;;  %345 = vmatpush.msra.mxu0 %v325_v4  ;;  %v714_v8 = vld [vmem:[%s313_s22] sm:$0xff]  ;;  %v415_v10 = vld [vmem:[%s804_s5 + $0x28] sm:$0xff]  ;;  %v413_v14 = vld [vmem:[%s804_s5 + $0x18] sm:$0xff]  ;;  %s319_s14 = scalar_lea.vmem %s806_s7, %s809_s28 }
   0xf   : > { %430 = vmatpush.msra.mxu3 %v417_v6  ;;  %600 = vmatmul.msk.f32.vlgmr.msra.gmra.mxu0 %vm326_vm0, %v714_v8  ;;  %v381_v11 = vld [vmem:[%s803_s4 + $0x48] sm:$0xff]  ;;  %v414_v12 = vld [vmem:[%s804_s5 + $0x20] sm:$0xff]  ;;  %v379_v15 = vld [vmem:[%s803_s4 + $0x38] sm:$0xff] }
  0x10   : > { %390 = vmatpush.msra.mxu2 %v385_v2  ;;  %v380_v13 = vld [vmem:[%s803_s4 + $0x40] sm:$0xff]  ;;  %v378_v16 = vld [vmem:[%s803_s4 + $0x30] sm:$0xff]  ;;  %v377_v17 = vld [vmem:[%s803_s4 + $0x28] sm:$0xff] }
  0x11   : > { %431 = vmatpush.msra.mxu3 %v416_v7  ;;  %v376_v18 = vld [vmem:[%s803_s4 + $0x20] sm:$0xff]  ;;  %v375_v19 = vld [vmem:[%s803_s4 + $0x18] sm:$0xff]  ;;  %v374_v20 = vld [vmem:[%s803_s4 + $0x10] sm:$0xff] }
  0x12   : > { %391 = vmatpush.msra.mxu2 %v384_v3  ;;  %v373_v21 = vld [vmem:[%s803_s4 + $0x8] sm:$0xff]  ;;  %v372_v22 = vld [vmem:[%s803_s4] sm:$0xff]  ;;  %v412_v24 = vld [vmem:[%s804_s5 + $0x10] sm:$0xff] }
  0x13   : > { %432 = vmatpush.msra.mxu3 %v415_v10  ;;  %v371_v23 = vld [vmem:[%s316_s16] sm:$0x1]  ;;  %v411_v25 = vld [vmem:[%s804_s5 + $0x8] sm:$0xff] }
  0x14   : > { %392 = vmatpush.msra.mxu2 %v383_v5  ;;  %v410_v26 = vld [vmem:[%s804_s5] sm:$0xff] }
  0x15   : > { %433 = vmatpush.msra.mxu3 %v414_v12  ;;  %v467_v38 = vld [vmem:[%s805_s6] sm:$0xf] }
  0x16   : > { %393 = vmatpush.msra.mxu2 %v382_v9  ;;  %v350_v39 = vld [vmem:[%s802_s3] sm:$0xff]  ;;  %603 = vmatpush.msk.msrb.mxu0 %vm471_vm3, %v467_v38 }
  0x17   : > { %434 = vmatpush.msra.mxu3 %v413_v14  ;;  %366 = vmatpush.msra.mxu1 %v350_v39 }
  0x18   : > { %394 = vmatpush.msra.mxu2 %v381_v11  ;;  %601 = vmatmul.msk.f32.vlgmr.msra.gmra.mxu1 %vm326_vm0, %v714_v8 }
  0x19   : > { %435 = vmatpush.msra.mxu3 %v412_v24 }
  0x1a   : > { %395 = vmatpush.msra.mxu2 %v380_v13 }
  0x1b   : > { %436 = vmatpush.msra.mxu3 %v411_v25 }
  0x1c   : > { %396 = vmatpush.msra.mxu2 %v379_v15 }
  0x1d   : > { %437 = vmatpush.msra.mxu3 %v410_v26 }
  0x1e   : > { %397 = vmatpush.msra.mxu2 %v378_v16 }
  0x20   : > { %398 = vmatpush.msra.mxu2 %v377_v17 }
  0x22   : > { %399 = vmatpush.msra.mxu2 %v376_v18 }
  0x24   : > { %400 = vmatpush.msra.mxu2 %v375_v19 }
  0x26   : > { %401 = vmatpush.msra.mxu2 %v374_v20 }
  0x28   : > { %402 = vmatpush.msra.mxu2 %v373_v21 }
  0x2a   : > { %403 = vmatpush.msra.mxu2 %v372_v22 }
  0x2b   : > { %404 = vmatmul.f32.vlgmr.msra.gmra.mxu2 %v371_v23 }
  0x8c   : > { %v347_v28 = vpop.f32.mrf.mxu0 }
  0x95   : > { %v368_v58 = vpop.f32.mrf.mxu1 }
  0xae   : > { %v405_v27 = vpop.f32.mrf.mxu2 }
  0xaf   : > { %v408_v29 = vperm.slane %v405_v27, 0 }
  0xb1   : > { %v409_v30 = vmul.f32 %v408_v29, %v347_v28 }
  0xb3   : > { %602 = vmatmul.msk.f32.vlgmr.msra.gmra.mxu3 %vm418_vm1, %v409_v30 }
 0x136   : > { %v439_v31 = vpop.f32.mrf.mxu3 }
 0x137   : > { %v443_v32 = vsel %vm442_vm2, %v439_v31, -inf  ;;  %503 = vst.msk [vmem:[%s323_s30] sm:$0xff] %vm442_vm2, %v439_v31 }
 0x138   : > { %v444_v33 = vrot.slane %v443_v32, 4 }
 0x13a   : > { %v445_v34 = vmax.f32 %v443_v32, %v444_v33 }
 0x13c   : > { %v446_v35 = vrot.slane %v445_v34, 2 }
 0x13e   : > { %v447_v36 = vmax.f32 %v445_v34, %v446_v35 }
 0x140   : > { %v448_v37 = vrot.slane %v447_v36, 1 }
 0x142   : > { %v449_v40 = vmax.f32 %v447_v36, %v448_v37 }
 0x144   : > { %v450_v41 = vmax.f32 %v449_v40, 0.0 }
 0x146   : > { %v451_v42 = vsub.f32 %v439_v31, %v450_v41  ;;  %v461_v44 = vsub.f32 0.0, %v450_v41 }
 0x148   : > { %v452_v43 = vmul.f32 1.442695, %v451_v42  ;;  %v462_v48 = vmul.f32 1.442695, %v461_v44 }
 0x14a   : > { %615 = vpow2.f32 %v452_v43 }
 0x14b   : > { %617 = vpow2.f32 %v462_v48 }
 0x150   : > { %v616_v45 = vpop.eup %615 }
 0x151   : > { %v454_v46 = vsel %vm442_vm2, %v616_v45, 0.0  ;;  %v618_v54 = vpop.eup %617 }
 0x152   : > { %v455_v47 = vrot.slane %v454_v46, 4 }
 0x154   : > { %v456_v49 = vadd.f32 %v455_v47, %v454_v46 }
 0x156   : > { %v457_v50 = vrot.slane %v456_v49, 2 }
 0x158   : > { %v458_v51 = vadd.f32 %v457_v50, %v456_v49 }
 0x15a   : > { %v459_v52 = vrot.slane %v458_v51, 1 }
 0x15c   : > { %v460_v53 = vadd.f32 %v459_v52, %v458_v51 }
 0x15e   : > { %v464_v55 = vadd.f32 %v618_v54, %v460_v53 }
 0x160   : > { %619 = vrcp.f32 %v464_v55 }
 0x166   : > { %v620_v56 = vpop.eup %619 }
 0x167   : > { %v466_v57 = vmul.f32 %v620_v56, %v616_v45 }
 0x169   : > { %604 = vmatmul.msk.f32.vlgmr.msrb.gmra.mxu0 %vm442_vm2, %v466_v57 }
 0x1e6   : > { %v492_v59 = vpop.f32.mrf.mxu0 }
 0x1e7   : > { %v495_v60 = vmul.f32 %v492_v59, %v368_v58 }
 0x1e9   : > { %v496_v61 = vsel %vm418_vm1, %v495_v60, 0.0 }
 0x1ea   : > { %v497_v62 = vrot.slane %v496_v61, 4 }
 0x1ec   : > { %v498_v63 = vadd.f32 %v497_v62, %v496_v61 }
 0x1ee   : > { %v499_v0 = vrot.slane %v498_v63, 2 }
 0x1f0   : > { %v500_v1 = vadd.f32 %v499_v0, %v498_v63 }
 0x1f2   : > { %v501_v2 = vrot.slane %v500_v1, 1 }
 0x1f4   : > { %v502_v3 = vadd.f32 %v501_v2, %v500_v1 }
 0x1f6   : > { %505 = vst.msk [vmem:[%s319_s14] sm:$0x1] %vm504_vm4, %v502_v3 }
 0x1f7 PF: > { %s19_s27 = sadd.s32 1, %s627_s27  }
 0x1f8   : > { %p16_p4 = scmp.ge.s32.totalorder %s19_s27, 4  }
 0x1fa   :  { %18 = sbr.rel (!%p16_p4) target bundleno = 1 (0x1), region = 93 }

</bundles_post_ra>
